<compile_context>
chip_gen: v7x
topology: tpu7x:2x2x1
jax: 0.10.0
libtpu: 0.0.40
codegen_flags: <defaults>
</compile_context>

<pallas_src>
import functools

import jax
import jax.numpy as jnp
from jax import lax
from jax.experimental import pallas as pl
from jax.experimental.pallas import tpu as pltpu

_LANE = 128
_SUB = 8
_OUT_BLOCK_BUDGET = 6 << 20   # ~6 MiB per output block
_VMEM_LIMIT = 32 << 20        # double-buffered in+out stays well under this


def _apply_normalize(col, row, h, w, if_normalize):
    if if_normalize:
        # (x / dim - 0.5) / 0.5  ==  x * (2/dim) - 1   (constants folded at trace)
        col = col * jnp.float32(2.0 / w) - 1.0
        row = row * jnp.float32(2.0 / h) - 1.0
    return col, row


def _flat_to_col_row(idx, w):
    """col = idx % w, row = idx // w for an int32 flat-spatial index tensor."""
    if w & (w - 1) == 0:
        # Power-of-two width: exact shift/mask, cheapest VALU path.
        shift = w.bit_length() - 1
        col = (idx & (w - 1)).astype(jnp.float32)
        row = (idx >> shift).astype(jnp.float32)
        return col, row
    # Non-power-of-two: f32 reciprocal + floor, then one correction step.
    # Exact for idx < ~2^23 (covers any realistic H*W), far cheaper than the
    # multiply-shift sequence int32 // and % lower to.
    idx_f = idx.astype(jnp.float32)
    row = jnp.floor(idx_f * jnp.float32(1.0 / w))
    col = idx_f - row * jnp.float32(w)
    hi = col >= jnp.float32(w)
    lo = col < jnp.float32(0.0)
    row = jnp.where(hi, row + 1.0, jnp.where(lo, row - 1.0, row))
    col = jnp.where(hi, col - jnp.float32(w), jnp.where(lo, col + jnp.float32(w), col))
    return col, row


def _addcoords_nchw_kernel(x_ref, o_ref, *, c, h, w, t_h, if_normalize):
    # x_ref: (C, T_H, W), o_ref: (C+2, T_H, W); W is a multiple of 128 and
    # T_H a multiple of 8 (or the full H extent) -> all stores are dense slabs.
    o_ref[:c] = x_ref[...]

    row0 = pl.program_id(0) * t_h
    col = lax.broadcasted_iota(jnp.int32, (t_h, w), 1).astype(jnp.float32)
    row = (lax.broadcasted_iota(jnp.int32, (t_h, w), 0) + row0).astype(jnp.float32)
    col, row = _apply_normalize(col, row, h, w, if_normalize)

    o_ref[c] = col.astype(o_ref.dtype)
    o_ref[c + 1] = row.astype(o_ref.dtype)


def _addcoords_flat_kernel(x_ref, o_ref, *, c, h, w, t_s, if_normalize):
    # x_ref: (C, T_S, 128), o_ref: (C+2, T_S, 128) -- flattened (padded) spatial.
    o_ref[:c] = x_ref[...]

    base = pl.program_id(0) * (t_s * _LANE)
    idx = (base
           + lax.broadcasted_iota(jnp.int32, (t_s, _LANE), 0) * _LANE
           + lax.broadcasted_iota(jnp.int32, (t_s, _LANE), 1))
    col, row = _flat_to_col_row(idx, w)
    col, row = _apply_normalize(col, row, h, w, if_normalize)

    # Two dense slab stores (no concat along the channel axis, no masked store).
    o_ref[c] = col.astype(o_ref.dtype)
    o_ref[c + 1] = row.astype(o_ref.dtype)


def _flat_tiling(hw, c_out, itemsize, budget_bytes):
    """Returns (hw_pad, n_rows, t_s): padded flat extent, rows of 128 lanes,
    and the sublane-row tile (multiple of 8 dividing n_rows, or full extent)."""
    n_rows = -(-hw // _LANE)                        # ceil(hw / 128)
    if n_rows <= _SUB:
        return n_rows * _LANE, n_rows, n_rows       # single tiny block, full extent
    n_rows = -(-n_rows // _SUB) * _SUB              # round rows up to a multiple of 8
    max_rows = max(_SUB, budget_bytes // (c_out * _LANE * itemsize))
    t_s = min(n_rows, max(_SUB, (max_rows // _SUB) * _SUB))
    while n_rows % t_s:
        t_s -= _SUB
    return n_rows * _LANE, n_rows, t_s


def add_coords(x, if_normalize: bool = False):
    b, c, h, w = x.shape
    itemsize = jnp.dtype(x.dtype).itemsize

    bytes_accessed = (2 * c + 2) * b * h * w * itemsize
    cost = pl.CostEstimate(flops=0, transcendentals=0, bytes_accessed=bytes_accessed)
    cparams = pltpu.CompilerParams(
        dimension_semantics=("parallel", "parallel"),
        vmem_limit_bytes=_VMEM_LIMIT)

    # ------------------------------------------------------------------ fast
    # Direct NCHW path: when W is already lane-dense, no wrapper reshape/pad at
    # all (avoids the full-tensor relayout copies flagged in review).
    if w % _LANE == 0:
        if h % _SUB == 0:
            max_rows = max(_SUB, _OUT_BLOCK_BUDGET // ((c + 2) * w * itemsize))
            t_h = min(h, max(_SUB, (max_rows // _SUB) * _SUB))
            while h % t_h:
                t_h -= _SUB
            use_direct = True
        else:
            t_h = h  # full extent block (allowed); only if it fits the budget
            use_direct = (c + 2) * h * w * itemsize <= _OUT_BLOCK_BUDGET
        if use_direct:
            kernel = functools.partial(
                _addcoords_nchw_kernel, c=c, h=h, w=w, t_h=t_h,
                if_normalize=if_normalize)
            return pl.pallas_call(
                kernel,
                out_shape=jax.ShapeDtypeStruct((b, c + 2, h, w), x.dtype),
                grid=(h // t_h, b),                       # spatial axis first (v7x TC split)
                in_specs=[pl.BlockSpec((None, c, t_h, w), lambda s, i: (i, 0, s, 0))],
                out_specs=pl.BlockSpec((None, c + 2, t_h, w), lambda s, i: (i, 0, s, 0)),
                compiler_params=cparams,
                cost_estimate=cost,
            )(x)

    # --------------------------------------------------------------- general
    # Flatten (H, W) -> HW, pad to dense (sublane, 128) tiles, reshape to
    # (B, C, HW_pad/128, 128) so the trailing two block dims are spatial and
    # channels sit in an untiled leading dim.
    hw = h * w
    hw_pad, n_rows, t_s = _flat_tiling(hw, c + 2, itemsize, _OUT_BLOCK_BUDGET)

    x_flat = x.reshape(b, c, hw)
    if hw_pad != hw:
        x_flat = jnp.pad(x_flat, ((0, 0), (0, 0), (0, hw_pad - hw)))
    x4 = x_flat.reshape(b, c, n_rows, _LANE)

    kernel = functools.partial(
        _addcoords_flat_kernel, c=c, h=h, w=w, t_s=t_s, if_normalize=if_normalize)

    out4 = pl.pallas_call(
        kernel,
        out_shape=jax.ShapeDtypeStruct((b, c + 2, n_rows, _LANE), x.dtype),
        grid=(n_rows // t_s, b),                          # spatial axis first (v7x TC split)
        in_specs=[pl.BlockSpec((None, c, t_s, _LANE), lambda s, i: (i, 0, s, 0))],
        out_specs=pl.BlockSpec((None, c + 2, t_s, _LANE), lambda s, i: (i, 0, s, 0)),
        compiler_params=cparams,
        cost_estimate=cost,
    )(x4)

    out = out4.reshape(b, c + 2, hw_pad)
    if hw_pad != hw:
        out = out[:, :, :hw]
    return out.reshape(b, c + 2, h, w)


def add_coords_ref(x, if_normalize: bool = False):
    b, c, h, w = x.shape
    dtype = x.dtype
    coord_i = jnp.broadcast_to(
        jnp.arange(w, dtype=dtype).reshape(1, 1, 1, w), (b, 1, h, w))
    coord_j = jnp.broadcast_to(
        jnp.arange(h, dtype=dtype).reshape(1, 1, h, 1), (b, 1, h, w))
    if if_normalize:
        coord_i = (coord_i / w - 0.5) / 0.5
        coord_j = (coord_j / h - 0.5) / 0.5
    return jnp.concatenate([x, coord_i, coord_j], axis=1)


if __name__ == "__main__":
    key = jax.random.PRNGKey(0)
    ok = True
    # (2,4,16,16): module's nominal small shape -> flattened path, power-of-2 W.
    # (1,3,16,128): lane-dense W -> direct NCHW path (no wrapper reshape).
    # (1,2,5,7) and (1,3,24,40): non-power-of-2 W + HW padding -> f32 div path.
    shapes = [(2, 4, 16, 16), (1, 3, 16, 128), (1, 2, 5, 7), (1, 3, 24, 40)]
    for t, (b, c, h, w) in enumerate(shapes):
        x = jax.random.normal(jax.random.fold_in(key, t), (b, c, h, w),
                              dtype=jnp.float32)
        for if_normalize in (False, True):
            out = jax.block_until_ready(add_coords(x, if_normalize=if_normalize))
            ref = add_coords_ref(x, if_normalize=if_normalize)
            if out.shape != (b, c + 2, h, w):
                ok = False
            if not jnp.allclose(out, ref, atol=1e-5, rtol=1e-5):
                ok = False
    print("KERNEL_OK" if ok else "KERNEL_MISMATCH")
</pallas_src>

<mosaic_0001>
module attributes {stable_mosaic.version = 11 : i64} {
  func.func @_addcoords_flat_kernel(%arg0: i32, %arg1: i32, %arg2: memref<1x4x2x128xf32, #tpu.memory_space<vmem>>, %arg3: memref<1x6x2x128xf32, #tpu.memory_space<vmem>>) attributes {dimension_semantics = [#tpu.dimension_semantics<parallel>, #tpu.dimension_semantics<parallel>], iteration_bounds = array<i64: 1, 2>, scalar_prefetch = 0 : i64, scratch_operands = 0 : i64, tpu.core_type = #tpu.core_type<tc>, window_params = [{transform_indices = @transform_0, window_bounds = array<i64: 1, 4, 2, 128>}, {transform_indices = @transform_1, window_bounds = array<i64: 1, 6, 2, 128>}]} {
    %c0 = arith.constant 0 : index
    %c0_0 = arith.constant 0 : index
    %c0_1 = arith.constant 0 : index
    %c0_2 = arith.constant 0 : index
    %0 = vector.load %arg2[%c0, %c0_0, %c0_1, %c0_2] : memref<1x4x2x128xf32, #tpu.memory_space<vmem>>, vector<1x4x2x128xf32>
    %1 = vector.shape_cast %0 : vector<1x4x2x128xf32> to vector<4x2x128xf32>
    %c0_3 = arith.constant 0 : index
    %c0_4 = arith.constant 0 : index
    %c0_5 = arith.constant 0 : index
    %c0_6 = arith.constant 0 : index
    %2 = vector.load %arg3[%c0_3, %c0_4, %c0_5, %c0_6] : memref<1x6x2x128xf32, #tpu.memory_space<vmem>>, vector<1x4x2x128xf32>
    %3 = vector.shape_cast %2 : vector<1x4x2x128xf32> to vector<4x2x128xf32>
    %4 = vector.shape_cast %1 : vector<4x2x128xf32> to vector<1x4x2x128xf32>
    tpu.vector_store %arg3[%c0_3, %c0_4, %c0_5, %c0_6], %4 {strides = array<i32>} : memref<1x6x2x128xf32, #tpu.memory_space<vmem>>, vector<1x4x2x128xf32>,
    %c256_i32 = arith.constant 256 : i32
    %5 = arith.muli %arg0, %c256_i32 : i32
    %6 = tpu.iota {dimensions = array<i32: 0>} : vector<2x128xi32>
    %c128_i32 = arith.constant 128 : i32
    %7 = vector.broadcast %c128_i32 : i32 to vector<2x128xi32>
    %8 = arith.muli %6, %7 : vector<2x128xi32>
    %9 = vector.broadcast %5 : i32 to vector<2x128xi32>
    %10 = arith.addi %9, %8 : vector<2x128xi32>
    %11 = tpu.iota {dimensions = array<i32: 1>} : vector<2x128xi32>
    %12 = arith.addi %10, %11 : vector<2x128xi32>
    %c15_i32 = arith.constant 15 : i32
    %13 = vector.broadcast %c15_i32 : i32 to vector<2x128xi32>
    %14 = arith.andi %12, %13 : vector<2x128xi32>
    %15 = arith.sitofp %14 : vector<2x128xi32> to vector<2x128xf32>
    %c4_i32 = arith.constant 4 : i32
    %16 = vector.broadcast %c4_i32 : i32 to vector<2x128xi32>
    %17 = arith.shrsi %12, %16 : vector<2x128xi32>
    %18 = arith.sitofp %17 : vector<2x128xi32> to vector<2x128xf32>
    %c0_7 = arith.constant 0 : index
    %c4 = arith.constant 4 : index
    %c0_8 = arith.constant 0 : index
    %c0_9 = arith.constant 0 : index
    %19 = vector.load %arg3[%c0_7, %c4, %c0_8, %c0_9] : memref<1x6x2x128xf32, #tpu.memory_space<vmem>>, vector<1x1x2x128xf32>
    %20 = vector.shape_cast %19 : vector<1x1x2x128xf32> to vector<2x128xf32>
    %21 = vector.shape_cast %15 : vector<2x128xf32> to vector<1x1x2x128xf32>
    tpu.vector_store %arg3[%c0_7, %c4, %c0_8, %c0_9], %21 {strides = array<i32>} : memref<1x6x2x128xf32, #tpu.memory_space<vmem>>, vector<1x1x2x128xf32>,
    %c0_10 = arith.constant 0 : index
    %c5 = arith.constant 5 : index
    %c0_11 = arith.constant 0 : index
    %c0_12 = arith.constant 0 : index
    %22 = vector.load %arg3[%c0_10, %c5, %c0_11, %c0_12] : memref<1x6x2x128xf32, #tpu.memory_space<vmem>>, vector<1x1x2x128xf32>
    %23 = vector.shape_cast %22 : vector<1x1x2x128xf32> to vector<2x128xf32>
    %24 = vector.shape_cast %18 : vector<2x128xf32> to vector<1x1x2x128xf32>
    tpu.vector_store %arg3[%c0_10, %c5, %c0_11, %c0_12], %24 {strides = array<i32>} : memref<1x6x2x128xf32, #tpu.memory_space<vmem>>, vector<1x1x2x128xf32>,
    return
  }
  func.func @transform_0(%arg0: i32, %arg1: i32) -> (i32, i32, i32, i32) {
    %c0_i32 = arith.constant 0 : i32
    %c0_i32_0 = arith.constant 0 : i32
    %c0_i32_1 = arith.constant 0 : i32
    return %arg1, %c0_i32, %arg0, %c0_i32_0 : i32, i32, i32, i32
  }
  func.func @transform_1(%arg0: i32, %arg1: i32) -> (i32, i32, i32, i32) {
    %c0_i32 = arith.constant 0 : i32
    %c0_i32_0 = arith.constant 0 : i32
    %c0_i32_1 = arith.constant 0 : i32
    return %arg1, %c0_i32, %arg0, %c0_i32_0 : i32, i32, i32, i32
  }
}

</mosaic_0001>

<bundles_post_ra>
// kernel: tpu_custom_call.1
= control target key start
LH: loop header
LB: loop body
LE: loop exit
PB: predicated region body
PF: predicated region fallthrough
CT: control target
= control target key end

     0   :  { %6 = vsyncpa [#allocation3], 0  ;;  %s666_s0 = inlined_call_operand.hbm [shape: f32[2,4,2,128], index: 0, kind: input, shape index: {}]   ;;  %s667_s1 = inlined_call_operand.hbm [shape: f32[2,6,2,128], index: 1, kind: output, shape index: {}]  }
   0x1   :  { %8 = vsyncpa [#allocation3 + $0x1], 0 }
   0x2   :  { %9 = vsyncpa [#allocation4], 0 }
   0x3   :  { %11 = vsyncpa [#allocation4 + $0x1], 0  ;;  %s490_s6 = smov 0   ;;  %s492_s7 = smov 0  }
   0x4   :  { %s494_s8 = smov 0   ;;  %s496_s9 = smov 0  }
   0x5   :  { %s498_s10 = smov 0   ;;  %s500_s11 = smov 0  }
   0x6 LB: > { %s277_s12 = sadd.s32 4294967295, %s472_s11   ;;  %s278_s13 = sadd.s32 4294967294, %s472_s11   ;;  %s472_s11 = sphi %s500_s11, %s17_s11   ;;  %s468_s10 = sphi %s498_s10, %s682_s10   ;;  %s464_s9 = sphi %s496_s9, %s681_s9   ;;  %s460_s8 = sphi %s494_s8, %s680_s8   ;;  %s456_s7 = sphi %s492_s7, %s679_s7   ;;  %s452_s6 = sphi %s490_s6, %s678_s6  }
   0x7   : > { %s26_s14 = sadd.s32 1, %s468_s10  ;;  %s38_s15 = sadd.s32 1, %s460_s8 }
   0x8   : > { %p27_p0 = scmp.ge.s32.totalorder %s26_s14, 2  ;;  %p45_p1 = scmp.ne.s32.totalorder %s460_s8, %s456_s7 }
   0x9   : > { %p46_p2 = scmp.eq.s32.totalorder %s472_s11, 0  ;;  %p51_p3 = scmp.ne.s32.totalorder %s456_s7, %s452_s6 }
   0xa   : > { %s684_s14 = smov (%p27_p0, %s26_s14), 0  ;;  %p52_p5 = scmp.eq.s32.totalorder %s277_s12, 0 }
   0xb   : > { %p531_p4 = por %p46_p2, %p45_p1  ;;  %s33_s17 = ssub.s32 %s468_s10, %s684_s14 }
   0xc   : > { %p77_p6 = scmp.eq.s32.totalorder %s277_s12, 1  ;;  %p36_p7 = scmp.eq.s32.totalorder %s33_s17, 0 }
   0xd   : > { %p537_p8 = por %p52_p5, %p51_p3  ;;  %p83_p10 = scmp.eq.s32.totalorder %s278_s13, 1 }
   0xe   : > { %p541_p9 = por %p77_p6, %p45_p1  ;;  %p306_p13 = scmp.lt.s32.totalorder %s472_s11, 2 }
   0xf   : > { %s546_s20 = scalar_select %p36_p7, %s460_s8, %s38_s15  }
  0x10   : > { %s671_s19 = scalar_select %p541_p9, 1, 0 }
  0x11   : > { %p548_p11 = por %p83_p10, %p51_p3  ;;  %s103_s22 = sand.u32 1, %s460_s8  }
  0x12   : > { %s281_s23 = sshll.u32 %s103_s22, 3  ;;  %s291_s24 = sshll.u32 %s468_s10, 7 }
  0x13   : > { %s672_s21 = scalar_select %p548_p11, 1, 0 }
  0x14   : > { %s559_s27 = scalar_lea.hbm %s666_s0, %s291_s24  ;;  %s107_s28 = scalar_lea.vmem [#allocation2], %s281_s23 }
  0x15   : > { %s115_s29 = sshll.u32 %s107_s28, 4  ;;  %p565_p0 = pnand %p306_p13, %p531_p4  ;;  %s561_s29 = int_to_ptr.vmem [resolvable:$true] %s115_s29 }
  0x16   : > { %s570_s2 = scalar_lea.sflag [#allocation3], %s103_s22  ;;  %s360_s3 = scalar_lea.hbm %s559_s27, 128 }
  0x17   : > { %p361_p2 = scmp.ne.s32.totalorder %s559_s27, %s360_s3  ;;  %p362_p3 = pneg %p565_p0 }
  0x18   : > { %s365_s12 = scalar_lea.hbm %s666_s0, 256  ;;  %p366_p4 = scmp.lt.u32.totalorder %s559_s27, %s666_s0 }
  0x19   : > { %p363_p5 = pnand %p362_p3, %p361_p2  ;;  %p367_p7 = scmp.lt.u32.totalorder %s365_s12, %s360_s3 }
  0x1a   : > { %p369_p13 = scmp.lt.u32.totalorder %s360_s3, %s559_s27 }
  0x1b   : > { %p364_p6 = pneg %p363_p5  ;;  %p368_p10 = por %p367_p7, %p366_p4 }
  0x1d   : > { %p370_p12 = por %p369_p13, %p368_p10 }
  0x1f   : > { %p371_p1 = pnand %p370_p12, %p364_p6 }
  0x21   : > { %374 = shalt.err (!%p371_p1)
}
  0x22   : > { %s375_s16 = scalar_lea.vmem %s561_s29, 128  ;;  %s474_s17 = smov [#allocation2]  }
  0x23   : > { %p376_p2 = scmp.ne.s32.totalorder %s561_s29, %s375_s16  ;;  %s380_s22 = sshll.u32 %s474_s17, 4  ;;  %s381_s22 = int_to_ptr.vmem [resolvable:$false] %s380_s22 }
  0x24   : > { %s382_s23 = scalar_lea.vmem %s381_s22, 256  ;;  %p383_p9 = scmp.lt.s32.totalorder %s561_s29, %s381_s22 }
  0x25   : > { %p378_p5 = pnand %p376_p2, %p362_p3  ;;  %p384_p4 = scmp.lt.s32.totalorder %s382_s23, %s375_s16 }
  0x27   : > { %p379_p11 = pneg %p378_p5  ;;  %p385_p7 = por %p384_p4, %p383_p9 }
  0x29   : > { %p386_p10 = pnand %p385_p7, %p379_p11 }
  0x2b   : > { %389 = shalt.err (!%p386_p10)
}
  0x2c   : > { %s475_s24 = smov 32   ;;  %s476_s25 = smov 2  }
  0x2d   : > { %301 = dma.hbm_to_vmem [thread:$0]  (!%p565_p0), %s559_s27, 128, %s561_s29, %s570_s2, %s475_s24, %s475_s24, %s476_s25  }
  0x2e   : > { %p123_p12 = scmp.lt.s32.totalorder %s472_s11, 3  ;;  %p674_p1 = scmp.ge.s32.totalorder %s472_s11, 1 }
  0x30   : > { %p124_p3 = pnand %p674_p1, %p123_p12 }
  0x31   : > { %s602_s26 = sand.u32 (!%p124_p3), 1, %s456_s7  }
  0x32   : > { %127 = sbr.rel (%p124_p3) target bundleno = 85 (0x55), region = 24  ;;  %s285_s28 = sshll.u32 (!%p124_p3), %s602_s26, 3 }
  0x33   : > { %s130_s3 = scalar_lea.sflag (!%p124_p3), [#allocation3], %s602_s26  ;;  %s133_s4 = scalar_lea.vmem (!%p124_p3), [#allocation2], %s285_s28 }
  0x39   : > { %443 = dma.done.wait (%p537_p8), %s130_s3, 128  }
  0x3a   : > { %445 = vsyncadd (%p537_p8), %s130_s3, 4294967168  ;;  %s292_s27 = smul.u32 12, %s602_s26  ;;  %v161_v0 = vlaneseq  ;;  %v152_v5 = vld [vmem:[%s133_s4] sm:$0xff]   ;;  %p675_p9 = scmp.ne.s32.totalorder %s671_s19, 0 }
  0x3b   : > { %s293_s29 = smul.u32 192, %s464_s9  ;;  %s178_s9 = scalar_lea.sflag [#allocation4], %s602_s26 }
  0x3c   : > { %v162_v1 = vshrl.u32 %v161_v0, 7  ;;  %v167_v2 = vand.u32 127, %v161_v0  ;;  %s151_s30 = scalar_lea.vmem [#allocation5], %s292_s27  ;;  %s477_s15 = smov [#allocation5]  }
  0x3d   : > { %s192_s2 = sshll.u32 %s151_s30, 4  ;;  %156 = vst [vmem:[%s151_s30] sm:$0xff] %v152_v5   ;;  %s617_s12 = scalar_lea.hbm %s667_s1, %s293_s29  ;;  %s612_s2 = int_to_ptr.vmem [resolvable:$true] %s192_s2 }
  0x3e   : > { %v163_v3 = vmul.u32 128, %v162_v1  ;;  %s390_s13 = scalar_lea.vmem %s612_s2, 192  ;;  %s394_s16 = sshll.u32 %s477_s15, 4  ;;  %s395_s16 = int_to_ptr.vmem [resolvable:$false] %s394_s16 }
  0x3f   : > { %p391_p8 = scmp.ne.s32.totalorder %s612_s2, %s390_s13  ;;  %s396_s17 = scalar_lea.vmem %s395_s16, 384 }
  0x40   : > { %v168_v4 = vadd.s32 %v167_v2, %v163_v3  ;;  %p397_p6 = scmp.lt.s32.totalorder %s612_s2, %s395_s16  ;;  %p398_p13 = scmp.lt.s32.totalorder %s396_s17, %s390_s13 }
  0x41   : > { %p392_p11 = pnand %p391_p8, %p675_p9 }
  0x42   : > { %v169_v6 = vand.u32 15, %v168_v4  ;;  %v171_v7 = vshra.s32 %v168_v4, 4  ;;  %p399_p2 = por %p398_p13, %p397_p6 }
  0x43   : > { %p393_p0 = pneg %p392_p11 }
  0x44   : > { %v170_v8 = vcvt.s32.f32 %v169_v6  ;;  %v172_v9 = vcvt.s32.f32 %v171_v7 }
  0x45   : > { %p400_p5 = pnand %p399_p2, %p393_p0 }
  0x46   : > { %286 = vst [vmem:[%s151_s30 + $0x8] sm:$0x3] %v170_v8  ;;  %287 = vst [vmem:[%s151_s30 + $0xa] sm:$0x3] %v172_v9 }
  0x47   : > { %403 = shalt.err (!%p400_p5)
}
  0x48   : > { %s404_s22 = scalar_lea.hbm %s617_s12, 192  ;;  %s408_s25 = scalar_lea.hbm %s667_s1, 384 }
  0x49   : > { %p405_p4 = scmp.ne.s32.totalorder %s617_s12, %s404_s22  ;;  %p409_p12 = scmp.lt.u32.totalorder %s617_s12, %s667_s1 }
  0x4a   : > { %p410_p1 = scmp.lt.u32.totalorder %s408_s25, %s404_s22  ;;  %p412_p8 = scmp.lt.u32.totalorder %s404_s22, %s617_s12 }
  0x4b   : > { %p406_p7 = pnand %p405_p4, %p675_p9 }
  0x4c   : > { %p411_p3 = por %p410_p1, %p409_p12 }
  0x4d   : > { %p407_p10 = pneg %p406_p7 }
  0x4e   : > { %p413_p11 = por %p412_p8, %p411_p3 }
  0x50   : > { %p414_p0 = pnand %p413_p11, %p407_p10 }
  0x52   : > { %417 = shalt.err (!%p414_p0)
}
  0x53   : > { %s478_s4 = smov 32   ;;  %s479_s27 = smov 2  }
  0x54   : > { %296 = dma.vmem_to_hbm [thread:$0]  (%p675_p9), %s612_s2, 192, %s617_s12, %s178_s9, %s478_s4, %s478_s4, %s479_s27  }
  0x55 PF: > { %s207_s29 = sand.u32 1, %s452_s6   ;;  %p676_p6 = scmp.ne.s32.totalorder %s672_s21, 0 }
  0x56   : > { %p677_p13 = scmp.ge.s32.totalorder %s472_s11, 2  ;;  %s208_s30 = scalar_lea.sflag [#allocation4], %s207_s29 }
  0x58   : > { %p303_p2 = pnand %p677_p13, %p676_p6 }
  0x5a   : > { %447 = dma.done.wait (!%p303_p2), %s208_s30, 192  }
  0x5b   : > { %449 = vsyncadd (!%p303_p2), %s208_s30, 4294967104  ;;  %s17_s11 = sadd.s32 1, %s472_s11   ;;  %s678_s6 = smov %s456_s7 }
  0x5c   : > { %p14_p5 = scmp.ge.s32.totalorder %s17_s11, 4   ;;  %s679_s7 = smov %s460_s8 }
  0x5d   : > { %s680_s8 = smov %s546_s20  ;;  %s681_s9 = smov %s468_s10 }
  0x5e   : > { %s682_s10 = smov %s684_s14  ;;  %16 = sbr.rel (!%p14_p5) target bundleno = 6 (0x6), region = 71 }
  0x65   :  { %213 = vsyncpa [#allocation3], 1 }
  0x66   :  { %215 = vsyncpa [#allocation3 + $0x1], 1 }
  0x67   :  { %216 = vsyncpa [#allocation4], 1 }
  0x68   :  { %218 = vsyncpa [#allocation4 + $0x1], 1 }

</bundles_post_ra>
